<compile_context>
chip_gen: v7x
topology: tpu7x:2x2x1
jax: 0.10.0
libtpu: 0.0.40
codegen_flags: <defaults>
</compile_context>

<pallas_src>
import functools

import jax
import jax.numpy as jnp
from jax import lax
from jax.experimental import pallas as pl
from jax.experimental.pallas import tpu as pltpu

IN_DIM = 4
HIDDEN = 128
OUT_DIM = 1
LANE_CHUNK = 512          # batch lanes processed per inner-loop iteration


def _round_up(x, m):
    return (x + m - 1) // m * m


def _choose_tiling(B, tm):
    """Returns (chunk, tm_eff, Bp): inner chunk, per-step batch tile, padded batch."""
    # Inner lane chunk: multiple of 128, at most LANE_CHUNK (tiny batches in one go).
    chunk = min(LANE_CHUNK, _round_up(B, 128))
    # Per-grid-step batch tile: multiple of chunk, capped by request and batch.
    tm_eff = max(chunk, _round_up(min(tm, B), chunk))
    # v7x megacore: make sure the ("parallel",) grid axis has >= 2 steps when the
    # batch is big enough, so the second TensorCore gets work.
    if B > chunk:
        tm_eff = min(tm_eff, _round_up((B + 1) // 2, chunk))
    Bp = _round_up(B, tm_eff)
    return chunk, tm_eff, Bp


def value_net_kernel(x_ref, w1b_ref, b1b_ref, w2b_ref, b2_ref, o_ref):
    # x_ref  : [cpt, IN_DIM, chunk]   batch on lanes, chunk index on axis 0
    # w1b_ref: [IN_DIM, HIDDEN, chunk]  w1[k,:] pre-broadcast across lanes
    # b1b_ref: [HIDDEN, chunk]          b1 pre-broadcast across lanes
    # w2b_ref: [HIDDEN, chunk]          w2 pre-broadcast across lanes
    # b2_ref : [1, 1]                   scalar in SMEM
    # o_ref  : [cpt, 1, chunk]          lane-dense output chunks
    n_chunks = x_ref.shape[0]

    def chunk_body(c, carry):
        x_c = x_ref[c]                                  # [IN_DIM, chunk]
        # Layer 1: Linear(4, 128) as 4 unrolled VPU broadcast-FMAs.
        # w1b_ref[k] is already lane-wide, so only the cheap sublane broadcast
        # of x_c[k] remains.
        acc = w1b_ref[0] * x_c[0:1, :]                  # [HIDDEN, chunk]
        for k in range(1, IN_DIM):
            acc = acc + w1b_ref[k] * x_c[k:k + 1, :]
        h = jnp.maximum(acc + b1b_ref[...], 0.0)        # bias + ReLU (VPU)
        # Layer 2: Linear(128, 1) = elementwise scale + sublane reduction.
        y = jnp.sum(h * w2b_ref[...], axis=0, keepdims=True)     # [1, chunk]
        o_ref[c] = (y + b2_ref[0, 0]).astype(o_ref.dtype)
        return carry

    # Unrolled so the LLO scheduler sees the whole per-tile instruction stream,
    # while intermediates stay bounded at one [HIDDEN, chunk] slab per temp.
    lax.fori_loop(0, n_chunks, chunk_body, 0, unroll=True)


@functools.partial(jax.jit, static_argnames=("tm",))
def value_net_forward(x, w1, b1, w2, b2, *, tm=8192):
    """x: [B, 4] float32  ->  [B, 1] float32.

    w1: [4, 128], b1: [128], w2: [128, 1], b2: [1]  (weights stored [in, out]).
    tm: requested batch rows per grid step (amortizes the ~0.35 us/step Pallas
        overhead); the inner chunk loop keeps VMEM use flat as tm grows.
    """
    B = x.shape[0]
    chunk, tm_eff, Bp = _choose_tiling(B, tm)
    n_chunks_total = Bp // chunk
    cpt = tm_eff // chunk                              # chunks per grid step

    x = x.astype(jnp.float32)
    if Bp != B:
        x = jnp.pad(x, ((0, Bp - B), (0, 0)))          # padded rows sliced off below
    # One relayout pass over x: [Bp, IN_DIM] -> [n_chunks, IN_DIM, chunk]
    # (batch on the 128-lane axis inside each chunk).
    x3 = x.reshape(n_chunks_total, chunk, IN_DIM).swapaxes(1, 2)

    # Pre-broadcast the lane-broadcast operands once (tiny, VMEM-resident across
    # the whole grid) so the kernel issues plain vlds, not XLU broadcasts.
    w1b = jnp.broadcast_to(w1.astype(jnp.float32)[:, :, None],
                           (IN_DIM, HIDDEN, chunk))
    b1b = jnp.broadcast_to(b1.astype(jnp.float32)[:, None], (HIDDEN, chunk))
    w2b = jnp.broadcast_to(w2.astype(jnp.float32).reshape(HIDDEN, 1),
                           (HIDDEN, chunk))
    b2s = b2.astype(jnp.float32).reshape(1, 1)

    out3 = pl.pallas_call(
        value_net_kernel,
        out_shape=jax.ShapeDtypeStruct((n_chunks_total, 1, chunk), jnp.float32),
        grid=(Bp // tm_eff,),
        in_specs=[
            pl.BlockSpec((cpt, IN_DIM, chunk), lambda i: (i, 0, 0)),   # x chunks
            pl.BlockSpec((IN_DIM, HIDDEN, chunk), lambda i: (0, 0, 0)),  # w1 (resident)
            pl.BlockSpec((HIDDEN, chunk), lambda i: (0, 0)),           # b1 (resident)
            pl.BlockSpec((HIDDEN, chunk), lambda i: (0, 0)),           # w2 (resident)
            pl.BlockSpec(memory_space=pltpu.MemorySpace.SMEM),         # b2 scalar
        ],
        out_specs=pl.BlockSpec((cpt, 1, chunk), lambda i: (i, 0, 0)),  # lane-dense out
        compiler_params=pltpu.CompilerParams(
            dimension_semantics=("parallel",),          # megacore sharding on v7x
            vmem_limit_bytes=32 * 1024 * 1024,          # safe on v5e/v6e/v7x
        ),
    )(x3, w1b, b1b, w2b, b2s)

    return out3.reshape(Bp, 1)[:B]                      # [B, 1]


def init_params(key):
    """Deterministic init mimicking nn.Linear default (uniform +/- 1/sqrt(fan_in))."""
    k1, k2, k3, k4 = jax.random.split(key, 4)
    bound1 = 1.0 / jnp.sqrt(jnp.float32(IN_DIM))
    bound2 = 1.0 / jnp.sqrt(jnp.float32(HIDDEN))
    # Stored already transposed: [in, out]  (PyTorch stores [out, in]).
    w1 = jax.random.uniform(k1, (IN_DIM, HIDDEN), jnp.float32, -bound1, bound1)
    b1 = jax.random.uniform(k2, (HIDDEN,), jnp.float32, -bound1, bound1)
    w2 = jax.random.uniform(k3, (HIDDEN, OUT_DIM), jnp.float32, -bound2, bound2)
    b2 = jax.random.uniform(k4, (OUT_DIM,), jnp.float32, -bound2, bound2)
    return w1, b1, w2, b2


def reference_forward(x, w1, b1, w2, b2):
    h = jnp.maximum(jnp.dot(x, w1, precision=jax.lax.Precision.HIGHEST) + b1, 0.0)
    return jnp.dot(h, w2, precision=jax.lax.Precision.HIGHEST) + b2


if __name__ == "__main__":
    key = jax.random.PRNGKey(0)
    k_x, k_x2, k_p = jax.random.split(key, 3)

    w1, b1, w2, b2 = init_params(k_p)

    # Small demo batch (single tile, single chunk).
    B = 8
    x = jax.random.normal(k_x, (B, IN_DIM), jnp.float32)
    out = jax.block_until_ready(value_net_forward(x, w1, b1, w2, b2))
    ref = reference_forward(x, w1, b1, w2, b2)
    assert out.shape == (B, OUT_DIM)
    assert jnp.allclose(out, ref, atol=1e-5, rtol=1e-5), "mismatch vs reference (B=8)"

    # Exercise: 2 parallel grid steps (v7x megacore), multiple chunks per step,
    # and a padded batch tail.
    B2 = 1900
    x2 = jax.random.normal(k_x2, (B2, IN_DIM), jnp.float32)
    out2 = jax.block_until_ready(value_net_forward(x2, w1, b1, w2, b2))
    ref2 = reference_forward(x2, w1, b1, w2, b2)
    assert out2.shape == (B2, OUT_DIM)
    assert jnp.allclose(out2, ref2, atol=1e-5, rtol=1e-5), "mismatch vs reference (B=1900)"

    print("KERNEL_OK")
</pallas_src>

<mosaic_0001>
module attributes {stable_mosaic.version = 11 : i64} {
  func.func @value_net_kernel(%arg0: i32, %arg1: memref<1x4x128xf32, #tpu.memory_space<vmem>>, %arg2: memref<4x128x128xf32, #tpu.memory_space<vmem>>, %arg3: memref<128x128xf32, #tpu.memory_space<vmem>>, %arg4: memref<128x128xf32, #tpu.memory_space<vmem>>, %arg5: memref<1x1xf32, #tpu.memory_space<smem>>, %arg6: memref<1x1x128xf32, #tpu.memory_space<vmem>>) attributes {dimension_semantics = [#tpu.dimension_semantics<parallel>], iteration_bounds = array<i64: 1>, scalar_prefetch = 0 : i64, scratch_operands = 0 : i64, tpu.core_type = #tpu.core_type<tc>, window_params = [{transform_indices = @transform_0, window_bounds = array<i64: 1, 4, 128>}, {pipeline_mode = #tpu.pipeline_mode<synchronous>, transform_indices = @transform_1, window_bounds = array<i64: 4, 128, 128>}, {pipeline_mode = #tpu.pipeline_mode<synchronous>, transform_indices = @transform_2, window_bounds = array<i64: 128, 128>}, {pipeline_mode = #tpu.pipeline_mode<synchronous>, transform_indices = @transform_3, window_bounds = array<i64: 128, 128>}, {transform_indices = @transform_4, window_bounds = array<i64: 1, 1>}, {transform_indices = @transform_5, window_bounds = array<i64: 1, 1, 128>}]} {
    %c0_i32 = arith.constant 0 : i32
    %0 = arith.index_cast %c0_i32 : i32 to index
    %c0 = arith.constant 0 : index
    %c0_0 = arith.constant 0 : index
    %1 = vector.load %arg1[%0, %c0, %c0_0] : memref<1x4x128xf32, #tpu.memory_space<vmem>>, vector<1x4x128xf32>
    %2 = vector.shape_cast %1 : vector<1x4x128xf32> to vector<4x128xf32>
    %c0_1 = arith.constant 0 : index
    %c0_2 = arith.constant 0 : index
    %c0_3 = arith.constant 0 : index
    %3 = vector.load %arg2[%c0_1, %c0_2, %c0_3] : memref<4x128x128xf32, #tpu.memory_space<vmem>>, vector<1x128x128xf32>
    %4 = vector.shape_cast %3 : vector<1x128x128xf32> to vector<128x128xf32>
    %5 = vector.extract_strided_slice %2 {offsets = [0, 0], sizes = [1, 128], strides = [1, 1]} : vector<4x128xf32> to vector<1x128xf32>
    %6 = vector.broadcast %5 : vector<1x128xf32> to vector<128x128xf32>
    %7 = arith.mulf %4, %6 : vector<128x128xf32>
    %c1 = arith.constant 1 : index
    %c0_4 = arith.constant 0 : index
    %c0_5 = arith.constant 0 : index
    %8 = vector.load %arg2[%c1, %c0_4, %c0_5] : memref<4x128x128xf32, #tpu.memory_space<vmem>>, vector<1x128x128xf32>
    %9 = vector.shape_cast %8 : vector<1x128x128xf32> to vector<128x128xf32>
    %10 = vector.extract_strided_slice %2 {offsets = [1, 0], sizes = [1, 128], strides = [1, 1]} : vector<4x128xf32> to vector<1x128xf32>
    %11 = vector.broadcast %10 : vector<1x128xf32> to vector<128x128xf32>
    %12 = arith.mulf %9, %11 : vector<128x128xf32>
    %13 = arith.addf %7, %12 : vector<128x128xf32>
    %c2 = arith.constant 2 : index
    %c0_6 = arith.constant 0 : index
    %c0_7 = arith.constant 0 : index
    %14 = vector.load %arg2[%c2, %c0_6, %c0_7] : memref<4x128x128xf32, #tpu.memory_space<vmem>>, vector<1x128x128xf32>
    %15 = vector.shape_cast %14 : vector<1x128x128xf32> to vector<128x128xf32>
    %16 = vector.extract_strided_slice %2 {offsets = [2, 0], sizes = [1, 128], strides = [1, 1]} : vector<4x128xf32> to vector<1x128xf32>
    %17 = vector.broadcast %16 : vector<1x128xf32> to vector<128x128xf32>
    %18 = arith.mulf %15, %17 : vector<128x128xf32>
    %19 = arith.addf %13, %18 : vector<128x128xf32>
    %c3 = arith.constant 3 : index
    %c0_8 = arith.constant 0 : index
    %c0_9 = arith.constant 0 : index
    %20 = vector.load %arg2[%c3, %c0_8, %c0_9] : memref<4x128x128xf32, #tpu.memory_space<vmem>>, vector<1x128x128xf32>
    %21 = vector.shape_cast %20 : vector<1x128x128xf32> to vector<128x128xf32>
    %22 = vector.extract_strided_slice %2 {offsets = [3, 0], sizes = [1, 128], strides = [1, 1]} : vector<4x128xf32> to vector<1x128xf32>
    %23 = vector.broadcast %22 : vector<1x128xf32> to vector<128x128xf32>
    %24 = arith.mulf %21, %23 : vector<128x128xf32>
    %25 = arith.addf %19, %24 : vector<128x128xf32>
    %c0_10 = arith.constant 0 : index
    %c0_11 = arith.constant 0 : index
    %26 = vector.load %arg3[%c0_10, %c0_11] : memref<128x128xf32, #tpu.memory_space<vmem>>, vector<128x128xf32>
    %27 = arith.addf %25, %26 : vector<128x128xf32>
    %cst = arith.constant 0.000000e+00 : f32
    %28 = vector.broadcast %cst : f32 to vector<128x128xf32>
    %29 = arith.maximumf %27, %28 : vector<128x128xf32>
    %c0_12 = arith.constant 0 : index
    %c0_13 = arith.constant 0 : index
    %30 = vector.load %arg4[%c0_12, %c0_13] : memref<128x128xf32, #tpu.memory_space<vmem>>, vector<128x128xf32>
    %31 = arith.mulf %29, %30 : vector<128x128xf32>
    %cst_14 = arith.constant dense<0.000000e+00> : vector<128xf32>
    %32 = vector.multi_reduction <add>, %31, %cst_14 [0] : vector<128x128xf32> to vector<128xf32>
    %33 = vector.shape_cast %32 : vector<128xf32> to vector<1x128xf32>
    %c0_15 = arith.constant 0 : index
    %c0_16 = arith.constant 0 : index
    %34 = memref.load %arg5[%c0_15, %c0_16] : memref<1x1xf32, #tpu.memory_space<smem>>
    %35 = vector.broadcast %34 : f32 to vector<1x128xf32>
    %36 = arith.addf %33, %35 : vector<1x128xf32>
    %37 = arith.index_cast %c0_i32 : i32 to index
    %c0_17 = arith.constant 0 : index
    %c0_18 = arith.constant 0 : index
    %38 = vector.load %arg6[%37, %c0_17, %c0_18] : memref<1x1x128xf32, #tpu.memory_space<vmem>>, vector<1x1x128xf32>
    %39 = vector.shape_cast %38 : vector<1x1x128xf32> to vector<1x128xf32>
    %40 = vector.shape_cast %36 : vector<1x128xf32> to vector<1x1x128xf32>
    tpu.vector_store %arg6[%37, %c0_17, %c0_18], %40 {strides = array<i32>} : memref<1x1x128xf32, #tpu.memory_space<vmem>>, vector<1x1x128xf32>,
    %c1_i32 = arith.constant 1 : i32
    return
  }
  func.func @transform_0(%arg0: i32) -> (i32, i32, i32) {
    %c0_i32 = arith.constant 0 : i32
    %c0_i32_0 = arith.constant 0 : i32
    %c0_i32_1 = arith.constant 0 : i32
    return %arg0, %c0_i32, %c0_i32_0 : i32, i32, i32
  }
  func.func @transform_1(%arg0: i32) -> (i32, i32, i32) {
    %c0_i32 = arith.constant 0 : i32
    %c0_i32_0 = arith.constant 0 : i32
    %c0_i32_1 = arith.constant 0 : i32
    %c0_i32_2 = arith.constant 0 : i32
    return %c0_i32, %c0_i32_0, %c0_i32_1 : i32, i32, i32
  }
  func.func @transform_2(%arg0: i32) -> (i32, i32) {
    %c0_i32 = arith.constant 0 : i32
    %c0_i32_0 = arith.constant 0 : i32
    %c0_i32_1 = arith.constant 0 : i32
    return %c0_i32, %c0_i32_0 : i32, i32
  }
  func.func @transform_3(%arg0: i32) -> (i32, i32) {
    %c0_i32 = arith.constant 0 : i32
    %c0_i32_0 = arith.constant 0 : i32
    %c0_i32_1 = arith.constant 0 : i32
    return %c0_i32, %c0_i32_0 : i32, i32
  }
  func.func @transform_4(%arg0: i32) -> (i32, i32) {
    %c0_i32 = arith.constant 0 : i32
    %c0_i32_0 = arith.constant 0 : i32
    %c0_i32_1 = arith.constant 0 : i32
    return %c0_i32, %c0_i32_0 : i32, i32
  }
  func.func @transform_5(%arg0: i32) -> (i32, i32, i32) {
    %c0_i32 = arith.constant 0 : i32
    %c0_i32_0 = arith.constant 0 : i32
    %c0_i32_1 = arith.constant 0 : i32
    return %arg0, %c0_i32, %c0_i32_0 : i32, i32, i32
  }
}

</mosaic_0001>

<bundles_post_ra>
// kernel: value_net_forward.1
= control target key start
LH: loop header
LB: loop body
LE: loop exit
PB: predicated region body
PF: predicated region fallthrough
CT: control target
= control target key end

     0   :  { %v38_v0 = vlaneseq  ;;  %s791_s0 = inlined_call_operand.vmem [shape: f32[1,4,128], index: 0, kind: input, shape index: {}]   ;;  %s792_s1 = inlined_call_operand.vmem [shape: f32[4,128,128], index: 1, kind: input, shape index: {}]   ;;  %s793_s2 = inlined_call_operand.vmem [shape: f32[128,128], index: 2, kind: input, shape index: {}]   ;;  %s794_s3 = inlined_call_operand.vmem [shape: f32[128,128], index: 3, kind: input, shape index: {}]   ;;  %s795_s4 = inlined_call_operand.<no memory space> [shape: f32[1,1], index: 4, kind: input, shape index: {}]   ;;  %s796_s5 = inlined_call_operand.vmem [shape: f32[1,1,128], index: 5, kind: output, shape index: {}]  }
   0x1   :  { %v21_v4 = vld [vmem:[%s791_s0] sm:$0xf]  ;;  %v23_v7 = vld [vmem:[%s792_s1 + $0x8] sm:$0xff]  ;;  %v24_v8 = vld [vmem:[%s792_s1 + $0x10] sm:$0xff] }
   0x2   :  { %v39_v1 = vshrl.u32 %v38_v0, 7  ;;  %v22_v6 = vld [vmem:[%s792_s1] sm:$0xff]  ;;  %v25_v11 = vld [vmem:[%s792_s1 + $0x18] sm:$0xff]  ;;  %v327_v13 = vld [vmem:[%s792_s1 + $0x88] sm:$0xff] }
   0x3   :  { %v326_v12 = vld [vmem:[%s792_s1 + $0x80] sm:$0xff]  ;;  %v27_v16 = vld [vmem:[%s792_s1 + $0x28] sm:$0xff]  ;;  %v28_v17 = vld [vmem:[%s792_s1 + $0x30] sm:$0xff] }
   0x4   :  { %v40_v2 = vsub.s32 0, %v39_v1  ;;  %v77_v3 = vsub.s32 1, %v39_v1  ;;  %v130_v5 = vsub.s32 2, %v39_v1  ;;  %v183_v14 = vsub.s32 3, %v39_v1  ;;  %v26_v15 = vld [vmem:[%s792_s1 + $0x20] sm:$0xff]  ;;  %v29_v18 = vld [vmem:[%s792_s1 + $0x38] sm:$0xff] }
   0x5   :  { %v30_v19 = vld [vmem:[%s792_s1 + $0x40] sm:$0xff]  ;;  %v328_v20 = vld [vmem:[%s792_s1 + $0x90] sm:$0xff]  ;;  %v31_v22 = vld [vmem:[%s792_s1 + $0x48] sm:$0xff] }
   0x6   :  { %v41_v9 = vrot.slane %v21_v4, %v40_v2  ;;  %v416_v10 = vrot.slane %v21_v4, %v77_v3  ;;  %v445_v21 = vrot.slane %v21_v4, %v130_v5  ;;  %v32_v23 = vld [vmem:[%s792_s1 + $0x50] sm:$0xff]  ;;  %v329_v26 = vld [vmem:[%s792_s1 + $0x98] sm:$0xff]  ;;  %v342_v33 = vld [vmem:[%s792_s1 + $0x100] sm:$0xff]  ;;  %v467_v35 = vrot.slane %v21_v4, %v183_v14 }
   0x7   :  { %v33_v29 = vld [vmem:[%s792_s1 + $0x58] sm:$0xff]  ;;  %v343_v34 = vld [vmem:[%s792_s1 + $0x108] sm:$0xff]  ;;  %v34_v36 = vld [vmem:[%s792_s1 + $0x60] sm:$0xff] }
   0x8   :  { %v42_v24 = vmul.f32 %v41_v9, %v22_v6  ;;  %v43_v25 = vmul.f32 %v41_v9, %v23_v7  ;;  %v79_v27 = vmul.f32 %v326_v12, %v416_v10  ;;  %v80_v28 = vmul.f32 %v327_v13, %v416_v10  ;;  %v35_v37 = vld [vmem:[%s792_s1 + $0x68] sm:$0xff]  ;;  %v36_v38 = vld [vmem:[%s792_s1 + $0x70] sm:$0xff]  ;;  %v37_v43 = vld [vmem:[%s792_s1 + $0x78] sm:$0xff] }
   0x9   :  { %v44_v30 = vmul.f32 %v41_v9, %v24_v8  ;;  %v45_v31 = vmul.f32 %v41_v9, %v25_v11  ;;  %v46_v32 = vmul.f32 %v41_v9, %v26_v15  ;;  %v47_v39 = vmul.f32 %v41_v9, %v27_v16  ;;  %v330_v47 = vld [vmem:[%s792_s1 + $0xa0] sm:$0xff]  ;;  %v344_v49 = vld [vmem:[%s792_s1 + $0x110] sm:$0xff]  ;;  %v331_v50 = vld [vmem:[%s792_s1 + $0xa8] sm:$0xff] }
   0xa   :  { %v478_v40 = vmul.f32 %v41_v9, %v28_v17  ;;  %v480_v41 = vmul.f32 %v41_v9, %v29_v18  ;;  %v81_v42 = vmul.f32 %v328_v20, %v416_v10  ;;  %v486_v44 = vmul.f32 %v41_v9, %v30_v19  ;;  %v332_v51 = vld [vmem:[%s792_s1 + $0xb0] sm:$0xff]  ;;  %v345_v54 = vld [vmem:[%s792_s1 + $0x118] sm:$0xff]  ;;  %v358_v62 = vld [vmem:[%s792_s1 + $0x180] sm:$0xff] }
   0xb   :  { %v488_v45 = vmul.f32 %v41_v9, %v31_v22  ;;  %v490_v46 = vmul.f32 %v41_v9, %v32_v23  ;;  %v82_v48 = vmul.f32 %v329_v26, %v416_v10  ;;  %v95_v52 = vadd.f32 %v79_v27, %v42_v24  ;;  %v333_v61 = vld [vmem:[%s792_s1 + $0xb8] sm:$0xff]  ;;  %v359_v63 = vld [vmem:[%s792_s1 + $0x188] sm:$0xff]  ;;  %v334_v1 = vld [vmem:[%s792_s1 + $0xc0] sm:$0xff] }
   0xc   :  { %v96_v53 = vadd.f32 %v80_v28, %v43_v25  ;;  %v132_v55 = vmul.f32 %v342_v33, %v445_v21  ;;  %v133_v56 = vmul.f32 %v343_v34, %v445_v21  ;;  %v510_v57 = vmul.f32 %v41_v9, %v33_v29  ;;  %v335_v2 = vld [vmem:[%s792_s1 + $0xc8] sm:$0xff]  ;;  %v336_v3 = vld [vmem:[%s792_s1 + $0xd0] sm:$0xff]  ;;  %v346_v11 = vld [vmem:[%s792_s1 + $0x120] sm:$0xff] }
   0xd   :  { %v512_v58 = vmul.f32 %v41_v9, %v34_v36  ;;  %v514_v59 = vmul.f32 %v41_v9, %v35_v37  ;;  %v516_v60 = vmul.f32 %v41_v9, %v36_v38  ;;  %v527_v0 = vmul.f32 %v41_v9, %v37_v43  ;;  %v360_v13 = vld [vmem:[%s792_s1 + $0x190] sm:$0xff]  ;;  %v337_v14 = vld [vmem:[%s792_s1 + $0xd8] sm:$0xff]  ;;  %v338_v15 = vld [vmem:[%s792_s1 + $0xe0] sm:$0xff] }
   0xe   :  { %v83_v4 = vmul.f32 %v330_v47, %v416_v10  ;;  %v97_v5 = vadd.f32 %v81_v42, %v44_v30  ;;  %v134_v6 = vmul.f32 %v344_v49, %v445_v21  ;;  %v84_v7 = vmul.f32 %v331_v50, %v416_v10  ;;  %v347_v16 = vld [vmem:[%s792_s1 + $0x128] sm:$0xff]  ;;  %v361_v26 = vld [vmem:[%s792_s1 + $0x198] sm:$0xff]  ;;  %v340_v28 = vld [vmem:[%s792_s1 + $0xf0] sm:$0xff] }
   0xf   :  { %v85_v8 = vmul.f32 %v332_v51, %v416_v10  ;;  %v98_v9 = vadd.f32 %v82_v48, %v45_v31  ;;  %v135_v12 = vmul.f32 %v345_v54, %v445_v21  ;;  %v148_v17 = vadd.f32 %v132_v55, %v95_v52  ;;  %v339_v27 = vld [vmem:[%s792_s1 + $0xe8] sm:$0xff]  ;;  %v341_v29 = vld [vmem:[%s792_s1 + $0xf8] sm:$0xff]  ;;  %v348_v42 = vld [vmem:[%s792_s1 + $0x130] sm:$0xff] }
  0x10   :  { %v149_v18 = vadd.f32 %v133_v56, %v96_v53  ;;  %v185_v19 = vmul.f32 %v358_v62, %v467_v35  ;;  %v186_v20 = vmul.f32 %v359_v63, %v467_v35  ;;  %v86_v22 = vmul.f32 %v333_v61, %v416_v10  ;;  %v349_v47 = vld [vmem:[%s792_s1 + $0x138] sm:$0xff]  ;;  %v363_v55 = vld [vmem:[%s792_s1 + $0x1a8] sm:$0xff]  ;;  %v217_v56 = vld [vmem:[%s793_s2] sm:$0xff] }
  0x11   :  { %v87_v23 = vmul.f32 %v334_v1, %v416_v10  ;;  %v88_v24 = vmul.f32 %v335_v2, %v416_v10  ;;  %v89_v25 = vmul.f32 %v336_v3, %v416_v10  ;;  %v99_v30 = vadd.f32 %v83_v4, %v46_v32  ;;  %v362_v32 = vld [vmem:[%s792_s1 + $0x1a0] sm:$0xff]  ;;  %v218_v61 = vld [vmem:[%s793_s2 + $0x8] sm:$0xff] }
  0x12   :  { %v136_v31 = vmul.f32 %v346_v11, %v445_v21  ;;  %v150_v33 = vadd.f32 %v134_v6, %v97_v5  ;;  %v187_v34 = vmul.f32 %v360_v13, %v467_v35  ;;  %v90_v36 = vmul.f32 %v337_v14, %v416_v10  ;;  %v350_v62 = vld [vmem:[%s792_s1 + $0x140] sm:$0xff]  ;;  %v364_v6 = vld [vmem:[%s792_s1 + $0x1b0] sm:$0xff] }
  0x13   :  { %v91_v37 = vmul.f32 %v338_v15, %v416_v10  ;;  %v100_v38 = vadd.f32 %v84_v7, %v47_v39  ;;  %v137_v43 = vmul.f32 %v347_v16, %v445_v21  ;;  %v151_v48 = vadd.f32 %v135_v12, %v98_v9  ;;  %v219_v7 = vld [vmem:[%s793_s2 + $0x10] sm:$0xff] }
  0x14   :  { %v188_v49 = vmul.f32 %v361_v26, %v467_v35  ;;  %v201_v50 = vadd.f32 %v185_v19, %v148_v17  ;;  %v202_v51 = vadd.f32 %v186_v20, %v149_v18  ;;  %v92_v39 = vmul.f32 %v339_v27, %v416_v10  ;;  %v220_v17 = vld [vmem:[%s793_s2 + $0x18] sm:$0xff]  ;;  %v352_v18 = vld [vmem:[%s792_s1 + $0x150] sm:$0xff]  ;;  %v221_v26 = vld [vmem:[%s793_s2 + $0x20] sm:$0xff] }
  0x15   :  { %v93_v52 = vmul.f32 %v340_v28, %v416_v10  ;;  %v594_v53 = vmul.f32 %v341_v29, %v416_v10  ;;  %v101_v54 = vadd.f32 %v85_v8, %v478_v40  ;;  %v138_v10 = vmul.f32 %v348_v42, %v445_v21  ;;  %v351_v8 = vld [vmem:[%s792_s1 + $0x148] sm:$0xff]  ;;  %v353_v27 = vld [vmem:[%s792_s1 + $0x158] sm:$0xff]  ;;  %v265_v42 = vld [vmem:[%s794_s3] sm:$0xff] }
  0x16   :  { %v152_v63 = vadd.f32 %v136_v31, %v99_v30  ;;  %v189_v40 = vmul.f32 %v362_v32, %v467_v35  ;;  %v203_v1 = vadd.f32 %v187_v34, %v150_v33  ;;  %v102_v2 = vadd.f32 %v86_v22, %v480_v41  ;;  %v365_v41 = vld [vmem:[%s792_s1 + $0x1b8] sm:$0xff] }
  0x17   :  { %v103_v3 = vadd.f32 %v87_v23, %v486_v44  ;;  %v139_v4 = vmul.f32 %v349_v47, %v445_v21  ;;  %v153_v5 = vadd.f32 %v137_v43, %v100_v38  ;;  %v190_v44 = vmul.f32 %v363_v55, %v467_v35  ;;  %v222_v38 = vld [vmem:[%s793_s2 + $0x28] sm:$0xff]  ;;  %v267_v55 = vld [vmem:[%s794_s3 + $0x10] sm:$0xff] }
  0x18   :  { %v204_v9 = vadd.f32 %v188_v49, %v151_v48  ;;  %v233_v11 = vadd.f32 %v217_v56, %v201_v50  ;;  %v234_v12 = vadd.f32 %v218_v61, %v202_v51  ;;  %v104_v13 = vadd.f32 %v88_v24, %v488_v45  ;;  %v366_v24 = vld [vmem:[%s792_s1 + $0x1c0] sm:$0xff]  ;;  %v266_v43 = vld [vmem:[%s794_s3 + $0x8] sm:$0xff]  ;;  %v369_v61 = vld [vmem:[%s792_s1 + $0x1d8] sm:$0xff] }
  0x19   :  { %v105_v14 = vadd.f32 %v89_v25, %v490_v46  ;;  %v106_v15 = vadd.f32 %v90_v36, %v510_v57  ;;  %v140_v16 = vmul.f32 %v350_v62, %v445_v21  ;;  %v154_v19 = vadd.f32 %v138_v10, %v101_v54  ;;  %v223_v54 = vld [vmem:[%s793_s2 + $0x30] sm:$0xff]  ;;  %v355_v56 = vld [vmem:[%s792_s1 + $0x168] sm:$0xff] }
  0x1a   :  { %v191_v20 = vmul.f32 %v364_v6, %v467_v35  ;;  %v205_v22 = vadd.f32 %v189_v40, %v152_v63  ;;  %v235_v23 = vadd.f32 %v219_v7, %v203_v1  ;;  %v107_v45 = vadd.f32 %v91_v37, %v512_v58  ;;  %v367_v58 = vld [vmem:[%s792_s1 + $0x1c8] sm:$0xff]  ;;  %v268_v6 = vld [vmem:[%s794_s3 + $0x18] sm:$0xff]  ;;  %v356_v7 = vld [vmem:[%s792_s1 + $0x170] sm:$0xff] }
  0x1b   :  { %v141_v46 = vmul.f32 %v351_v8, %v445_v21  ;;  %v155_v57 = vadd.f32 %v139_v4, %v102_v2  ;;  %v192_v25 = vmul.f32 %v365_v41, %v467_v35  ;;  %v206_v28 = vadd.f32 %v190_v44, %v153_v5  ;;  %v224_v5 = vld [vmem:[%s793_s2 + $0x38] sm:$0xff] }
  0x1c   :  { %v236_v29 = vadd.f32 %v220_v17, %v204_v9  ;;  %v249_v30 = vmax.f32 %v233_v11, 0.0  ;;  %v250_v31 = vmax.f32 %v234_v12, 0.0  ;;  %v108_v33 = vadd.f32 %v92_v39, %v514_v59  ;;  %v354_v59 = vld [vmem:[%s792_s1 + $0x160] sm:$0xff]  ;;  %v357_v17 = vld [vmem:[%s792_s1 + $0x178] sm:$0xff] }
  0x1d   :  { %v655_v34 = vadd.f32 %v93_v52, %v516_v60  ;;  %v142_v36 = vmul.f32 %v352_v18, %v445_v21  ;;  %v156_v37 = vadd.f32 %v140_v16, %v103_v3  ;;  %v368_v60 = vld [vmem:[%s792_s1 + $0x1d0] sm:$0xff]  ;;  %v193_v32 = vmul.f32 %v366_v24, %v467_v35  ;;  %v269_v16 = vld [vmem:[%s794_s3 + $0x20] sm:$0xff]  ;;  %v371_v18 = vld [vmem:[%s792_s1 + $0x1e8] sm:$0xff] }
  0x1e   :  { %v207_v47 = vadd.f32 %v191_v20, %v154_v19  ;;  %v237_v48 = vadd.f32 %v221_v26, %v205_v22  ;;  %v251_v49 = vmax.f32 %v235_v23, 0.0  ;;  %v143_v50 = vmul.f32 %v353_v27, %v445_v21  ;;  %v270_v26 = vld [vmem:[%s794_s3 + $0x28] sm:$0xff]  ;;  %v372_v27 = vld [vmem:[%s792_s1 + $0x1f0] sm:$0xff] }
  0x1f   :  { %v157_v51 = vadd.f32 %v141_v46, %v104_v13  ;;  %v194_v39 = vmul.f32 %v367_v58, %v467_v35  ;;  %v208_v52 = vadd.f32 %v192_v25, %v155_v57  ;;  %v238_v62 = vadd.f32 %v222_v38, %v206_v28  ;;  %v226_v25 = vld [vmem:[%s793_s2 + $0x48] sm:$0xff]  ;;  %v227_v38 = vld [vmem:[%s793_s2 + $0x50] sm:$0xff] }
  0x20   :  { %v252_v10 = vmax.f32 %v236_v29, 0.0  ;;  %v281_v63 = vmul.f32 %v265_v42, %v249_v30  ;;  %v282_v40 = vmul.f32 %v266_v43, %v250_v31  ;;  %v110_v1 = vadd.f32 %v594_v53, %v527_v0  ;;  %v370_v0 = vld [vmem:[%s792_s1 + $0x1e0] sm:$0xff]  ;;  %v271_v42 = vld [vmem:[%s794_s3 + $0x30] sm:$0xff]  ;;  %v373_v43 = vld [vmem:[%s792_s1 + $0x1f8] sm:$0xff] }
  0x21   :  { %v144_v2 = vmul.f32 %v354_v59, %v445_v21  ;;  %v158_v3 = vadd.f32 %v142_v36, %v105_v14  ;;  %v195_v4 = vmul.f32 %v368_v60, %v467_v35  ;;  %v209_v53 = vadd.f32 %v193_v32, %v156_v37  ;;  %v225_v14 = vld [vmem:[%s793_s2 + $0x40] sm:$0xff] }
  0x22   :  { %v239_v8 = vadd.f32 %v223_v54, %v207_v47  ;;  %v253_v41 = vmax.f32 %v237_v48, 0.0  ;;  %v283_v44 = vmul.f32 %v267_v55, %v251_v49  ;;  %v145_v9 = vmul.f32 %v355_v56, %v445_v21  ;;  %v228_v49 = vld [vmem:[%s793_s2 + $0x58] sm:$0xff] }
  0x23   :  { %v159_v11 = vadd.f32 %v143_v50, %v106_v15  ;;  %v196_v12 = vmul.f32 %v369_v61, %v467_v35  ;;  %v210_v13 = vadd.f32 %v194_v39, %v157_v51  ;;  %v240_v15 = vadd.f32 %v224_v5, %v208_v52  ;;  %v272_v50 = vld [vmem:[%s794_s3 + $0x38] sm:$0xff] }
  0x24   :  { %v254_v19 = vmax.f32 %v238_v62, 0.0  ;;  %v284_v20 = vmul.f32 %v268_v6, %v252_v10  ;;  %v297_v22 = vadd.f32 %v282_v40, %v281_v63  ;;  %v146_v23 = vmul.f32 %v356_v7, %v445_v21  ;;  %v273_v62 = vld [vmem:[%s794_s3 + $0x40] sm:$0xff] }
  0x25   :  { %v160_v46 = vadd.f32 %v144_v2, %v107_v45  ;;  %v197_v57 = vmul.f32 %v370_v0, %v467_v35  ;;  %v211_v24 = vadd.f32 %v195_v4, %v158_v3  ;;  %v241_v58 = vadd.f32 %v225_v14, %v209_v53  ;;  %v231_v53 = vld [vmem:[%s793_s2 + $0x70] sm:$0xff] }
  0x26   :  { %v255_v28 = vmax.f32 %v239_v8, 0.0  ;;  %v285_v29 = vmul.f32 %v269_v16, %v253_v41  ;;  %v298_v30 = vadd.f32 %v297_v22, %v283_v44  ;;  %v147_v45 = vmul.f32 %v357_v17, %v445_v21  ;;  %v275_v8 = vld [vmem:[%s794_s3 + $0x50] sm:$0xff] }
  0x27   :  { %v161_v31 = vadd.f32 %v145_v9, %v108_v33  ;;  %v198_v36 = vmul.f32 %v371_v18, %v467_v35  ;;  %v212_v37 = vadd.f32 %v196_v12, %v159_v11  ;;  %v242_v59 = vadd.f32 %v226_v25, %v210_v13  ;;  %v232_v12 = vld [vmem:[%s793_s2 + $0x78] sm:$0xff] }
  0x28   :  { %v256_v60 = vmax.f32 %v240_v15, 0.0  ;;  %v286_v32 = vmul.f32 %v270_v26, %v254_v19  ;;  %v299_v21 = vadd.f32 %v298_v30, %v284_v20  ;;  %v162_v33 = vadd.f32 %v146_v23, %v655_v34  ;;  %v229_v34 = vld [vmem:[%s793_s2 + $0x60] sm:$0xff]  ;;  %v276_v13 = vld [vmem:[%s794_s3 + $0x58] sm:$0xff]  ;;  %v279_v26 = vld [vmem:[%s794_s3 + $0x70] sm:$0xff] }
  0x29   :  { %v199_v47 = vmul.f32 %v372_v27, %v467_v35  ;;  %v213_v48 = vadd.f32 %v197_v57, %v160_v46  ;;  %v243_v51 = vadd.f32 %v227_v38, %v211_v24  ;;  %v257_v39 = vmax.f32 %v241_v58, 0.0  ;;  %v277_v15 = vld [vmem:[%s794_s3 + $0x60] sm:$0xff]  ;;  %v278_v46 = vld [vmem:[%s794_s3 + $0x68] sm:$0xff] }
  0x2a   :  { %v287_v52 = vmul.f32 %v271_v42, %v255_v28  ;;  %v300_v54 = vadd.f32 %v299_v21, %v285_v29  ;;  %v163_v55 = vadd.f32 %v147_v45, %v110_v1  ;;  %v200_v56 = vmul.f32 %v373_v43, %v467_v35  ;;  %v230_v1 = vld [vmem:[%s793_s2 + $0x68] sm:$0xff]  ;;  %v280_v29 = vld [vmem:[%s794_s3 + $0x78] sm:$0xff] }
  0x2b   :  { %v214_v61 = vadd.f32 %v198_v36, %v161_v31  ;;  %v244_v10 = vadd.f32 %v228_v49, %v212_v37  ;;  %v258_v63 = vmax.f32 %v242_v59, 0.0  ;;  %v288_v40 = vmul.f32 %v272_v50, %v256_v60  ;;  %v274_v35 = vld [vmem:[%s794_s3 + $0x48] sm:$0xff] }
  0x2c   :  { %v301_v2 = vadd.f32 %v300_v54, %v286_v32  ;;  %v215_v3 = vadd.f32 %v199_v47, %v162_v33  ;;  %v245_v4 = vadd.f32 %v229_v34, %v213_v48  ;;  %v259_v5 = vmax.f32 %v243_v51, 0.0 }
  0x2d   :  { %v289_v6 = vmul.f32 %v273_v62, %v257_v39  ;;  %v216_v0 = vadd.f32 %v200_v56, %v163_v55  ;;  %v246_v41 = vadd.f32 %v230_v1, %v214_v61  ;;  %v260_v44 = vmax.f32 %v244_v10, 0.0 }
  0x2e   :  { %v302_v7 = vadd.f32 %v301_v2, %v287_v52  ;;  %v290_v9 = vmul.f32 %v274_v35, %v258_v63  ;;  %v247_v14 = vadd.f32 %v231_v53, %v215_v3  ;;  %v261_v16 = vmax.f32 %v245_v4, 0.0 }
  0x2f   :  { %v291_v17 = vmul.f32 %v275_v8, %v259_v5  ;;  %v248_v19 = vadd.f32 %v232_v12, %v216_v0  ;;  %v262_v20 = vmax.f32 %v246_v41, 0.0  ;;  %v292_v22 = vmul.f32 %v276_v13, %v260_v44 }
  0x30   :  { %v303_v11 = vadd.f32 %v302_v7, %v288_v40  ;;  %v263_v57 = vmax.f32 %v247_v14, 0.0  ;;  %v293_v24 = vmul.f32 %v277_v15, %v261_v16  ;;  %v319_v21 = vstv %s795_s4 }
  0x31   :  { %v264_v27 = vmax.f32 %v248_v19, 0.0  ;;  %v294_v58 = vmul.f32 %v278_v46, %v262_v20 }
  0x32   :  { %v304_v18 = vadd.f32 %v303_v11, %v289_v6  ;;  %v295_v30 = vmul.f32 %v279_v26, %v263_v57 }
  0x33   :  { %v296_v31 = vmul.f32 %v280_v29, %v264_v27 }
  0x34   :  { %v305_v23 = vadd.f32 %v304_v18, %v290_v9 }
  0x36   :  { %v306_v25 = vadd.f32 %v305_v23, %v291_v17 }
  0x38   :  { %v307_v28 = vadd.f32 %v306_v25, %v292_v22 }
  0x3a   :  { %v308_v45 = vadd.f32 %v307_v28, %v293_v24 }
  0x3c   :  { %v309_v36 = vadd.f32 %v308_v45, %v294_v58 }
  0x3e   :  { %v310_v37 = vadd.f32 %v309_v36, %v295_v30 }
  0x40   :  { %v311_v38 = vadd.f32 %v310_v37, %v296_v31 }
  0x42   :  { %v312_v42 = vrot.slane %v311_v38, 4 }
  0x44   :  { %v313_v43 = vadd.f32 %v312_v42, %v311_v38 }
  0x46   :  { %v314_v59 = vrot.slane %v313_v43, 2 }
  0x48   :  { %v315_v60 = vadd.f32 %v314_v59, %v313_v43 }
  0x4a   :  { %v316_v32 = vrot.slane %v315_v60, 1 }
  0x4c   :  { %v317_v33 = vadd.f32 %v316_v32, %v315_v60 }
  0x4e   :  { %v320_v47 = vadd.f32 %v319_v21, %v317_v33 }
  0x50   :  { %321 = vst [vmem:[%s796_s5] sm:$0x1] %v320_v47 }

</bundles_post_ra>
